<compile_context>
chip_gen: v7x
topology: tpu7x:2x2x1
jax: 0.10.0
libtpu: 0.0.40
codegen_flags: <defaults>
</compile_context>

<pallas_src>
import functools

import jax
import jax.numpy as jnp
from jax.experimental import pallas as pl
from jax.experimental.pallas import tpu as pltpu

_LANES = 128
_MIB = 1024 * 1024
# Below this many bytes per operand the blend is left to XLA (fusable jnp op);
# a standalone pallas_call is a fusion barrier and its fixed launch/pipeline
# overhead dominates for tiny activations.
_MIN_PALLAS_BYTES = 2 * _MIB


@functools.lru_cache(maxsize=1)
def _chip_budget():
    """Returns (block_bytes, vmem_limit_bytes | None, num_tensorcores, bf16_native)."""
    kind = ""
    try:
        kind = jax.devices()[0].device_kind.lower()
    except Exception:
        pass
    vmem_bytes = None
    try:
        vmem_bytes = int(pltpu.get_tpu_info().vmem_capacity_bytes)
    except Exception:
        vmem_bytes = None

    is_v7 = "v7" in kind
    bf16_native = ("v6" in kind) or is_v7  # v5e has no bf16 VALU

    if vmem_bytes is None:
        if is_v7:
            vmem_bytes = 64 * _MIB
        elif ("v5" in kind) or ("v6" in kind):
            vmem_bytes = 128 * _MIB

    if vmem_bytes is None:
        # Unknown chip: conservative, flag-free 2 MiB blocks (12 MiB footprint).
        return 2 * _MIB, None, 1, bf16_native
    if vmem_bytes <= 96 * _MIB:
        # v7x-class: 64 MiB VMEM per TC, 2 TCs per chip.
        return 6 * _MIB, 40 * _MIB, 2, bf16_native
    # v5e / v6e-class: 128 MiB physical VMEM, single TC.
    return 4 * _MIB, 32 * _MIB, 2 if is_v7 else 1, bf16_native


def _make_blend_kernel(promote_f32):
    def kernel(h_ref, x0_ref, o_ref):
        h = h_ref[...]
        x0 = x0_ref[...]
        if promote_f32:
            h = h.astype(jnp.float32)
            x0 = x0.astype(jnp.float32)
        # One mul instead of two: (h + x0) * 0.5 == 0.5*h + 0.5*x0 (binary scale).
        o_ref[...] = ((h + x0) * 0.5).astype(o_ref.dtype)

    return kernel


def _pick_tile_rows(rows, itemsize, block_bytes, num_cores):
    # Sublane packing granularity: 8 for 32-bit, 16 for 16-bit, 32 for 8-bit.
    sublane = {4: 8, 2: 16, 1: 32}.get(itemsize)
    assert sublane is not None, f"unsupported itemsize: {itemsize}"

    # Largest row-tile inside the per-operand byte budget, sublane-aligned.
    tr = max(sublane, (block_bytes // (_LANES * itemsize)) // sublane * sublane)

    if num_cores > 1:
        # Keep >= 2 grid steps per TensorCore so megacore sharding has work for
        # both cores on mid-sized tensors (otherwise one big block strands a TC).
        min_grid = 2 * num_cores
        if rows > min_grid * sublane:
            cap = pl.cdiv(rows, min_grid)
            cap = max(sublane, pl.cdiv(cap, sublane) * sublane)
            tr = min(tr, cap)

    if rows <= tr:
        # Single block covering the whole array (full-dim block is always legal).
        return rows
    return tr


def _blend_2d(h2d, x02d, donate_h):
    rows, lanes = h2d.shape
    dtype = h2d.dtype
    itemsize = jnp.dtype(dtype).itemsize

    block_bytes, vmem_limit, num_cores, bf16_native = _chip_budget()
    tr = _pick_tile_rows(rows, itemsize, block_bytes, num_cores)
    grid = (pl.cdiv(rows, tr),)  # ragged last block handled by boundary masking

    # Skip the f32 promotion only where the VPU is bf16-native (v6e/v7x).
    promote_f32 = not (dtype == jnp.float32 or (dtype == jnp.bfloat16 and bf16_native))

    cp_kwargs = dict(dimension_semantics=("parallel",))
    if vmem_limit is not None:
        cp_kwargs["vmem_limit_bytes"] = vmem_limit

    call_kwargs = {}
    if donate_h:
        call_kwargs["input_output_aliases"] = {0: 0}

    return pl.pallas_call(
        _make_blend_kernel(promote_f32),
        out_shape=jax.ShapeDtypeStruct((rows, lanes), dtype),
        grid=grid,
        in_specs=[
            pl.BlockSpec((tr, lanes), lambda i: (i, 0)),  # h tile
            pl.BlockSpec((tr, lanes), lambda i: (i, 0)),  # x0 tile
        ],
        out_specs=pl.BlockSpec((tr, lanes), lambda i: (i, 0)),
        compiler_params=pltpu.CompilerParams(**cp_kwargs),
        **call_kwargs,
    )(h2d, x02d)


def static_blend_skip(h, x0, *, donate_h=False, min_pallas_bytes=_MIN_PALLAS_BYTES):
    """StaticBlendSkip forward: 0.5 * h + 0.5 * x0.

    h, x0: arrays of identical shape/dtype (floating point), e.g. NCHW activations.
    donate_h: alias the output onto h's buffer (use only if h is dead afterwards).
    min_pallas_bytes: per-operand size below which a plain (fusable) jnp
      expression is used instead of the Pallas kernel.
    """
    assert h.shape == x0.shape, "h and x0 must have the same shape"
    assert h.dtype == x0.dtype, "h and x0 must have the same dtype"
    dtype = h.dtype
    assert jnp.issubdtype(dtype, jnp.floating), "StaticBlendSkip expects float inputs"

    total = h.size
    if total == 0:
        return h
    nbytes = total * jnp.dtype(dtype).itemsize

    if nbytes < min_pallas_bytes or total % _LANES != 0:
        # Small tensors: let XLA fuse the blend into neighboring ops.
        # Non-128-divisible totals: a fused elementwise op beats the old
        # pad/ravel/slice path, which tripled HBM traffic.
        hf = h.astype(jnp.float32)
        xf = x0.astype(jnp.float32)
        return ((hf + xf) * 0.5).astype(dtype)

    # Free, contiguous reshape to a lane-dense [rows, 128] slab.
    rows = total // _LANES
    out2d = _blend_2d(h.reshape(rows, _LANES), x0.reshape(rows, _LANES), donate_h)
    return out2d.reshape(h.shape)


if __name__ == "__main__":
    key = jax.random.PRNGKey(0)
    k1, k2, k3, k4, k5, k6 = jax.random.split(key, 6)

    # NCHW skip-connection shape (total divisible by 128) -> Pallas path.
    B, C, H, W = 2, 4, 16, 16
    h = jax.random.normal(k1, (B, C, H, W), dtype=jnp.float32)
    x0 = jax.random.normal(k2, (B, C, H, W), dtype=jnp.float32)

    # Force the Pallas kernel even at this small demo size.
    out = static_blend_skip(h, x0, min_pallas_bytes=0)
    jax.block_until_ready(out)
    ref = 0.5 * h + 0.5 * x0
    assert out.shape == (B, C, H, W)
    assert jnp.allclose(out, ref, atol=1e-6), "f32 Pallas path mismatch"

    # bf16 path (no-promotion branch on v6e/v7x, f32-promoted on v5e/unknown).
    hb = jax.random.normal(k3, (B, C, H, W), dtype=jnp.bfloat16)
    xb = jax.random.normal(k4, (B, C, H, W), dtype=jnp.bfloat16)
    outb = static_blend_skip(hb, xb, min_pallas_bytes=0)
    jax.block_until_ready(outb)
    refb = (hb.astype(jnp.float32) + xb.astype(jnp.float32)) * 0.5
    assert jnp.allclose(outb.astype(jnp.float32), refb, atol=2e-2), "bf16 Pallas path mismatch"

    # Default entry point: tiny / non-128-divisible totals take the fusable
    # jnp fallback (no pad/slice copies).
    h2 = jax.random.normal(k5, (2, 3, 5, 7), dtype=jnp.float32)
    x02 = jax.random.normal(k6, (2, 3, 5, 7), dtype=jnp.float32)
    out2 = static_blend_skip(h2, x02)
    jax.block_until_ready(out2)
    assert jnp.allclose(out2, 0.5 * h2 + 0.5 * x02, atol=1e-6), "fallback path mismatch"

    print("KERNEL_OK")
</pallas_src>

<mosaic_0001>
module attributes {stable_mosaic.version = 11 : i64} {
  func.func @kernel(%arg0: i32, %arg1: memref<16x128xf32, #tpu.memory_space<vmem>>, %arg2: memref<16x128xf32, #tpu.memory_space<vmem>>, %arg3: memref<16x128xf32, #tpu.memory_space<vmem>>) attributes {dimension_semantics = [#tpu.dimension_semantics<parallel>], iteration_bounds = array<i64: 1>, scalar_prefetch = 0 : i64, scratch_operands = 0 : i64, tpu.core_type = #tpu.core_type<tc>, window_params = [{transform_indices = @transform_0, window_bounds = array<i64: 16, 128>}, {transform_indices = @transform_1, window_bounds = array<i64: 16, 128>}, {transform_indices = @transform_2, window_bounds = array<i64: 16, 128>}]} {
    %c0 = arith.constant 0 : index
    %c0_0 = arith.constant 0 : index
    %0 = vector.load %arg1[%c0, %c0_0] : memref<16x128xf32, #tpu.memory_space<vmem>>, vector<16x128xf32>
    %c0_1 = arith.constant 0 : index
    %c0_2 = arith.constant 0 : index
    %1 = vector.load %arg2[%c0_1, %c0_2] : memref<16x128xf32, #tpu.memory_space<vmem>>, vector<16x128xf32>
    %2 = arith.addf %0, %1 : vector<16x128xf32>
    %cst = arith.constant 5.000000e-01 : f32
    %3 = vector.broadcast %cst : f32 to vector<16x128xf32>
    %4 = arith.mulf %2, %3 : vector<16x128xf32>
    %c0_3 = arith.constant 0 : index
    %c0_4 = arith.constant 0 : index
    %5 = vector.load %arg3[%c0_3, %c0_4] : memref<16x128xf32, #tpu.memory_space<vmem>>, vector<16x128xf32>
    tpu.vector_store %arg3[%c0_3, %c0_4], %4 {strides = array<i32>} : memref<16x128xf32, #tpu.memory_space<vmem>>, vector<16x128xf32>,
    return
  }
  func.func @transform_0(%arg0: i32) -> (i32, i32) {
    %c0_i32 = arith.constant 0 : i32
    %c0_i32_0 = arith.constant 0 : i32
    return %arg0, %c0_i32 : i32, i32
  }
  func.func @transform_1(%arg0: i32) -> (i32, i32) {
    %c0_i32 = arith.constant 0 : i32
    %c0_i32_0 = arith.constant 0 : i32
    return %arg0, %c0_i32 : i32, i32
  }
  func.func @transform_2(%arg0: i32) -> (i32, i32) {
    %c0_i32 = arith.constant 0 : i32
    %c0_i32_0 = arith.constant 0 : i32
    return %arg0, %c0_i32 : i32, i32
  }
}

</mosaic_0001>

<bundles_post_ra>
// kernel: tpu_custom_call.1
= control target key start
LH: loop header
LB: loop body
LE: loop exit
PB: predicated region body
PF: predicated region fallthrough
CT: control target
= control target key end

     0   :  { %7 = vsyncpa [#allocation3], 0  ;;  %s210_s0 = inlined_call_operand.hbm [shape: f32[16,128], index: 0, kind: input, shape index: {}]   ;;  %s211_s1 = inlined_call_operand.hbm [shape: f32[16,128], index: 1, kind: input, shape index: {}]   ;;  %s212_s2 = inlined_call_operand.hbm [shape: f32[16,128], index: 2, kind: output, shape index: {}]  }
   0x1   :  { %8 = vsyncpa [#allocation6], 0 }
   0x2   :  { %9 = vsyncpa [#allocation4], 0  ;;  %s145_s9 = smov [#allocation2]   ;;  %s73_s13 = scalar_lea.hbm %s210_s0, 256 }
   0x3   :  { %s15_s10 = sshll.u32 %s145_s9, 4  ;;  %p74_p0 = scmp.ne.s32.totalorder %s210_s0, %s73_s13  ;;  %s16_s10 = int_to_ptr.vmem [resolvable:$true] %s15_s10 }
   0x4   :  { %p77_p1 = scmp.lt.u32.totalorder %s73_s13, %s210_s0 }
   0x6   :  { %p79_p2 = pnand %p77_p1, %p74_p0 }
   0x8   :  { %82 = shalt.err (!%p79_p2)
}
   0x9   :  { %s83_s18 = scalar_lea.vmem %s16_s10, 256  ;;  %p88_p4 = scmp.lt.s32.totalorder %s16_s10, %s16_s10 }
   0xa   :  { %p84_p3 = scmp.ne.s32.totalorder %s16_s10, %s83_s18  ;;  %p89_p5 = scmp.lt.s32.totalorder %s83_s18, %s83_s18 }
   0xc   :  { %p90_p6 = por %p89_p5, %p88_p4 }
   0xe   :  { %p91_p7 = pnand %p90_p6, %p84_p3 }
  0x10   :  { %94 = shalt.err (!%p91_p7)
}
  0x11   :  { %s146_s19 = smov 128   ;;  %s147_s20 = smov 8  }
  0x12   :  { %21 = dma.hbm_to_vmem [thread:$0]  %s210_s0, 256, %s16_s10, [#allocation3], %s146_s19, %s146_s19, %s147_s20  }
  0x13   :  { %s148_s23 = smov [#allocation5]   ;;  %s95_s27 = scalar_lea.hbm %s211_s1, 256 }
  0x14   :  { %s27_s24 = sshll.u32 %s148_s23, 4  ;;  %p96_p8 = scmp.ne.s32.totalorder %s211_s1, %s95_s27  ;;  %s28_s24 = int_to_ptr.vmem [resolvable:$true] %s27_s24 }
  0x15   :  { %p99_p9 = scmp.lt.u32.totalorder %s95_s27, %s211_s1 }
  0x17   :  { %p101_p10 = pnand %p99_p9, %p96_p8 }
  0x19   :  { %104 = shalt.err (!%p101_p10)
}
  0x1a   :  { %s105_s4 = scalar_lea.vmem %s28_s24, 256  ;;  %p110_p12 = scmp.lt.s32.totalorder %s28_s24, %s28_s24 }
  0x1b   :  { %p106_p11 = scmp.ne.s32.totalorder %s28_s24, %s105_s4  ;;  %p111_p13 = scmp.lt.s32.totalorder %s105_s4, %s105_s4 }
  0x1d   :  { %p112_p0 = por %p111_p13, %p110_p12 }
  0x1f   :  { %p113_p1 = pnand %p112_p0, %p106_p11 }
  0x21   :  { %116 = shalt.err (!%p113_p1)
}
  0x22   :  { %33 = dma.hbm_to_vmem [thread:$0]  %s211_s1, 256, %s28_s24, [#allocation6], %s146_s19, %s146_s19, %s147_s20  }
  0x23   :  { %139 = dma.done.wait [#allocation3], 256  }
  0x24   :  { %140 = vsyncadd [#allocation3], 4294967040 }
  0x25   :  { %141 = dma.done.wait [#allocation6], 256  }
  0x26   :  { %142 = vsyncadd [#allocation6], 4294967040  ;;  %v40_v0 = vld [vmem:[#allocation2] sm:$0xff]  ;;  %v42_v1 = vld [vmem:[#allocation5] sm:$0xff]  ;;  %s149_s6 = smov [#allocation7]  }
  0x27   :  { %v41_v2 = vld [vmem:[#allocation2 + $0x8] sm:$0xff]  ;;  %v44_v3 = vadd.f32 %v42_v1, %v40_v0  ;;  %v43_v4 = vld [vmem:[#allocation5 + $0x8] sm:$0xff]  ;;  %s55_s7 = sshll.u32 %s149_s6, 4  ;;  %s56_s7 = int_to_ptr.vmem [resolvable:$true] %s55_s7 }
  0x28   :  { %v45_v5 = vadd.f32 %v43_v4, %v41_v2  ;;  %s117_s8 = scalar_lea.vmem %s56_s7, 256  ;;  %p122_p3 = scmp.lt.s32.totalorder %s56_s7, %s56_s7 }
  0x29   :  { %v46_v6 = vmul.f32 0.5, %v44_v3  ;;  %p118_p2 = scmp.ne.s32.totalorder %s56_s7, %s117_s8  ;;  %p123_p4 = scmp.lt.s32.totalorder %s117_s8, %s117_s8 }
  0x2a   :  { %v47_v7 = vmul.f32 0.5, %v45_v5 }
  0x2b   :  { %48 = vst [vmem:[#allocation7] sm:$0xff] %v46_v6  ;;  %p124_p5 = por %p123_p4, %p122_p3 }
  0x2c   :  { %49 = vst [vmem:[#allocation7 + $0x8] sm:$0xff] %v47_v7 }
  0x2d   :  { %p125_p6 = pnand %p124_p5, %p118_p2 }
  0x2f   :  { %128 = shalt.err (!%p125_p6)
}
  0x30   :  { %s129_s10 = scalar_lea.hbm %s212_s2, 256 }
  0x31   :  { %p130_p7 = scmp.ne.s32.totalorder %s212_s2, %s129_s10  ;;  %p133_p8 = scmp.lt.u32.totalorder %s129_s10, %s212_s2 }
  0x33   :  { %p135_p9 = pnand %p133_p8, %p130_p7 }
  0x35   :  { %138 = shalt.err (!%p135_p9)
}
  0x36   :  { %61 = dma.vmem_to_hbm [thread:$0]  %s56_s7, 256, %s212_s2, [#allocation4], %s146_s19, %s146_s19, %s147_s20  }
  0x37   :  { %143 = dma.done.wait [#allocation4], 256  }
  0x38   :  { %144 = vsyncadd [#allocation4], 4294967040 }
  0x39   :  { %65 = vsyncpa [#allocation3], 1 }
  0x3a   :  { %66 = vsyncpa [#allocation6], 1 }
  0x3b   :  { %67 = vsyncpa [#allocation4], 1 }

</bundles_post_ra>
